<compile_context>
chip_gen: v6e
topology: v6e:2x2x1
jax: 0.10.0
libtpu: 0.0.40
codegen_flags: <defaults>
</compile_context>

<pallas_src>
import functools

import jax
import jax.numpy as jnp
import numpy as np
from jax.experimental import pallas as pl
from jax.experimental.pallas import tpu as pltpu


def _token_embedding_kernel(x_ref, w_ref, b_ref, o_ref):
    # x_ref: (TB, K, TL)   fused circular taps, lane axis = L (padded to 128x)
    # w_ref: (TD, K)       fused weights  w_cat[o, k*C + c] = W[o, c, k]
    # b_ref: (TD, 1)       bias (always f32)
    # o_ref: (TB, TD, TL)  output slab (lane-dense in L)
    w = w_ref[...]
    b = b_ref[...]
    tb = x_ref.shape[0]          # static block size, small -> unrolled
    for i in range(tb):
        acc = jnp.dot(w, x_ref[i], preferred_element_type=jnp.float32)  # (TD, TL)
        o_ref[i] = (acc + b).astype(o_ref.dtype)


def _round_up(n, m):
    return ((n + m - 1) // m) * m


def _divisors(n, *, multiple_of=1, cap=None):
    cap = n if cap is None else min(cap, n)
    return [d for d in range(1, cap + 1) if n % d == 0 and d % multiple_of == 0]


def _select_tiles(B, D, K, L_pad, in_bytes, out_bytes, budget, tile_d_cap, tile_b_cap):
    """Pick (tb, td, tl) tiles: divisor-exact, (8,128)-legal, VMEM-budgeted."""
    td_cands = sorted(set(_divisors(D, multiple_of=8) + [D]))   # mult-of-8 or full D
    tb_cands = _divisors(B)
    tl_cands = [128 * g for g in _divisors(L_pad // 128)]       # multiples of 128

    def pick(cands, cap):
        ok = [c for c in cands if c <= cap]
        return ok[-1] if ok else cands[0]

    td = pick(td_cands, tile_d_cap)
    tb = pick(tb_cands, tile_b_cap)
    tl = pick(tl_cands, 4096)

    def nbytes(tb_, td_, tl_):
        x_b = tb_ * K * tl_ * in_bytes
        w_b = td_ * K * in_bytes
        bb_ = td_ * 128 * 4                 # (td,1) bias block lane-pads to 128
        o_b = tb_ * td_ * tl_ * out_bytes
        return 2 * (x_b + w_b + bb_ + o_b)  # double-buffered pipeline

    def shrink(val, cands):
        smaller = [c for c in cands if c < val]
        return smaller[-1] if smaller else val

    # Shrink (td -> tb -> tl) until the double-buffered working set fits.
    while nbytes(tb, td, tl) > budget:
        if shrink(td, td_cands) != td:
            td = shrink(td, td_cands); continue
        if shrink(tb, tb_cands) != tb:
            tb = shrink(tb, tb_cands); continue
        if shrink(tl, tl_cands) != tl:
            tl = shrink(tl, tl_cands); continue
        break  # cannot shrink further

    # v7x has 2 TensorCores: expose >= 2 parallel grid units when possible.
    if (B // tb) * (D // td) * (L_pad // tl) < 2:
        if tb > 1:
            tb = shrink(tb, tb_cands)
        elif shrink(td, td_cands) != td:
            td = shrink(td, td_cands)
        elif shrink(tl, tl_cands) != tl:
            tl = shrink(tl, tl_cands)
    return tb, td, tl


@functools.partial(jax.jit,
                   static_argnames=("compute_dtype", "out_dtype", "tile_d", "tile_b"))
def token_embedding_forward(x_ncl, weight, bias, *,
                            compute_dtype=None, out_dtype=None,
                            tile_d=512, tile_b=8):
    """
    x_ncl:   [B, c_in, L]        (PyTorch Conv1d input layout)
    weight:  [d_model, c_in, 3]  (PyTorch Conv1d weight layout)
    bias:    [d_model]
    returns: [B, d_model, L]

    compute_dtype: dtype of x / weights on the HBM->MXU path (None -> x.dtype;
                   pass bf16 x to avoid any wrapper cast pass). Accumulation and
                   the bias add are always f32.
    out_dtype:     output dtype (None -> float32, matching the torch module).
    """
    B, C, L = x_ncl.shape
    D = weight.shape[0]

    compute_dtype = x_ncl.dtype if compute_dtype is None else compute_dtype
    out_dtype = jnp.float32 if out_dtype is None else out_dtype

    # --- Build fused circular taps in the wrapper (x traffic is tiny vs. output):
    #   k=0 -> x[(t-1) mod L],  k=1 -> x[t],  k=2 -> x[(t+1) mod L]
    x = x_ncl.astype(compute_dtype)
    x_cat = jnp.concatenate(
        [jnp.roll(x, 1, axis=-1), x, jnp.roll(x, -1, axis=-1)], axis=1)   # (B, 3C, L)

    # Fuse taps into the contraction dim: w_cat[o, k*C + c] = weight[o, c, k].
    w_cat = jnp.transpose(weight, (0, 2, 1)).reshape(D, 3 * C)

    # --- Pad for clean TPU layout: K=3C -> mult of 8 (sublane-aligned MXU feed),
    #     L -> mult of 128 (lane-dense unmasked stores). Zero pads are inert.
    K_pad = _round_up(3 * C, 8)
    L_pad = _round_up(L, 128)
    x_cat = jnp.pad(x_cat, ((0, 0), (0, K_pad - 3 * C), (0, L_pad - L)))
    w_cat = jnp.pad(w_cat, ((0, 0), (0, K_pad - 3 * C))).astype(compute_dtype)
    b_2d = bias.reshape(D, 1).astype(jnp.float32)       # bias / accumulator stay f32

    in_bytes = np.dtype(compute_dtype).itemsize
    out_bytes = np.dtype(out_dtype).itemsize

    # --- Generation-aware VMEM budgeting (v5e/v6e: 128 MiB, v7x: 64 MiB).
    try:
        vmem_cap = pltpu.get_tpu_info().vmem_capacity_bytes
    except Exception:
        vmem_cap = 64 << 20
    if vmem_cap >= (96 << 20):              # v5e / v6e
        budget, vmem_limit = 64 << 20, 100 << 20
    else:                                   # v7x
        budget, vmem_limit = 24 << 20, 48 << 20

    tb, td, tl = _select_tiles(B, D, K_pad, L_pad, in_bytes, out_bytes,
                               budget, tile_d, tile_b)
    n_b, n_d, n_l = B // tb, D // td, L_pad // tl

    out_padded = pl.pallas_call(
        _token_embedding_kernel,
        out_shape=jax.ShapeDtypeStruct((B, D, L_pad), out_dtype),
        grid_spec=pltpu.PrefetchScalarGridSpec(
            num_scalar_prefetch=0,
            grid=(n_b, n_d, n_l),
            in_specs=[
                pl.BlockSpec((tb, K_pad, tl), lambda b, j, l: (b, 0, l)),
                pl.BlockSpec((td, K_pad), lambda b, j, l: (j, 0)),
                pl.BlockSpec((td, 1), lambda b, j, l: (j, 0)),
            ],
            out_specs=pl.BlockSpec((tb, td, tl), lambda b, j, l: (b, j, l)),
        ),
        compiler_params=pltpu.CompilerParams(
            dimension_semantics=("parallel", "parallel", "parallel"),
            vmem_limit_bytes=vmem_limit,
        ),
    )(x_cat, w_cat, b_2d)

    if L_pad != L:
        out_padded = out_padded[:, :, :L]
    return out_padded                                            # [B, d_model, L]


def _reference_forward(x_ncl, weight, bias):
    """Pure-JAX reference: circular pad + explicit conv (matches PyTorch Conv1d)."""
    x = x_ncl.astype(jnp.float32)
    x_pad = jnp.concatenate([x[:, :, -1:], x, x[:, :, :1]], axis=-1)  # circular pad=1
    L = x_ncl.shape[-1]
    out = 0.0
    for k in range(3):
        out = out + jnp.einsum("oc,bct->bot",
                               weight[:, :, k].astype(jnp.float32),
                               x_pad[:, :, k:k + L])
    return out + bias[None, :, None]


if __name__ == "__main__":
    # Small shapes consistent with the module's forward: [B, c_in, L] -> [B, d_model, L]
    B, C_IN, L, D_MODEL = 2, 4, 16, 32

    key = jax.random.PRNGKey(0)
    k_x, k_w, k_b = jax.random.split(key, 3)

    x = jax.random.normal(k_x, (B, C_IN, L), dtype=jnp.float32)

    # Deterministic params mirroring the module's __init__:
    #   kaiming_normal_(weight, mode='fan_in', nonlinearity='relu') -> std = sqrt(2/fan_in)
    #   default Conv1d bias: U(-1/sqrt(fan_in), 1/sqrt(fan_in))
    fan_in = C_IN * 3
    weight = jax.random.normal(k_w, (D_MODEL, C_IN, 3), dtype=jnp.float32) * jnp.sqrt(2.0 / fan_in)
    bound = 1.0 / jnp.sqrt(float(fan_in))
    bias = jax.random.uniform(k_b, (D_MODEL,), dtype=jnp.float32, minval=-bound, maxval=bound)

    ref = jax.block_until_ready(_reference_forward(x, weight, bias))

    # f32 path: matches the PyTorch module with dtype=torch.float32.
    out_f32 = jax.block_until_ready(token_embedding_forward(x, weight, bias))
    assert out_f32.shape == (B, D_MODEL, L), out_f32.shape
    assert out_f32.dtype == jnp.float32
    np.testing.assert_allclose(np.asarray(out_f32), np.asarray(ref), rtol=1e-5, atol=1e-5)

    # bf16 I/O path: bf16 x (no wrapper cast pass), bf16 output (halved write traffic),
    # f32 accumulation inside the kernel — looser tolerance.
    out_bf16 = jax.block_until_ready(
        token_embedding_forward(x.astype(jnp.bfloat16), weight, bias,
                                out_dtype=jnp.bfloat16))
    assert out_bf16.dtype == jnp.bfloat16
    np.testing.assert_allclose(np.asarray(out_bf16, dtype=np.float32), np.asarray(ref),
                               rtol=5e-2, atol=5e-2)

    print("KERNEL_OK")
</pallas_src>

<mosaic_0001>
module attributes {stable_mosaic.version = 11 : i64} {
  func.func @_token_embedding_kernel(%arg0: i32, %arg1: i32, %arg2: i32, %arg3: memref<1x16x128xf32, #tpu.memory_space<vmem>>, %arg4: memref<32x16xf32, #tpu.memory_space<vmem>>, %arg5: memref<32x1xf32, #tpu.memory_space<vmem>>, %arg6: memref<1x32x128xf32, #tpu.memory_space<vmem>>) attributes {dimension_semantics = [#tpu.dimension_semantics<parallel>, #tpu.dimension_semantics<parallel>, #tpu.dimension_semantics<parallel>], iteration_bounds = array<i64: 2, 1, 1>, scalar_prefetch = 0 : i64, scratch_operands = 0 : i64, tpu.core_type = #tpu.core_type<tc>, window_params = [{transform_indices = @transform_0, window_bounds = array<i64: 1, 16, 128>}, {transform_indices = @transform_1, window_bounds = array<i64: 32, 16>}, {transform_indices = @transform_2, window_bounds = array<i64: 32, 1>}, {transform_indices = @transform_3, window_bounds = array<i64: 1, 32, 128>}]} {
    %c0 = arith.constant 0 : index
    %c0_0 = arith.constant 0 : index
    %0 = vector.load %arg4[%c0, %c0_0] : memref<32x16xf32, #tpu.memory_space<vmem>>, vector<32x16xf32>
    %c0_1 = arith.constant 0 : index
    %c0_2 = arith.constant 0 : index
    %1 = vector.load %arg5[%c0_1, %c0_2] : memref<32x1xf32, #tpu.memory_space<vmem>>, vector<32x1xf32>
    %c0_3 = arith.constant 0 : index
    %c0_4 = arith.constant 0 : index
    %c0_5 = arith.constant 0 : index
    %2 = vector.load %arg3[%c0_3, %c0_4, %c0_5] : memref<1x16x128xf32, #tpu.memory_space<vmem>>, vector<1x16x128xf32>
    %3 = vector.shape_cast %2 : vector<1x16x128xf32> to vector<16x128xf32>
    %cst = arith.constant dense<0.000000e+00> : vector<32x128xf32>
    %4 = tpu.matmul %0, %3, %cst {dimension_numbers = #tpu.dot_dimension_numbers<[1], [0], [0], [1], [0, 0, 1, 1], [], []>} : vector<32x16xf32>, vector<16x128xf32>, vector<32x128xf32> -> vector<32x128xf32>
    %5 = vector.broadcast %1 : vector<32x1xf32> to vector<32x128xf32>
    %6 = arith.addf %4, %5 : vector<32x128xf32>
    %c0_6 = arith.constant 0 : index
    %c0_7 = arith.constant 0 : index
    %c0_8 = arith.constant 0 : index
    %7 = vector.load %arg6[%c0_6, %c0_7, %c0_8] : memref<1x32x128xf32, #tpu.memory_space<vmem>>, vector<1x32x128xf32>
    %8 = vector.shape_cast %7 : vector<1x32x128xf32> to vector<32x128xf32>
    %9 = vector.shape_cast %6 : vector<32x128xf32> to vector<1x32x128xf32>
    tpu.vector_store %arg6[%c0_6, %c0_7, %c0_8], %9 {strides = array<i32>} : memref<1x32x128xf32, #tpu.memory_space<vmem>>, vector<1x32x128xf32>,
    return
  }
  func.func @transform_0(%arg0: i32, %arg1: i32, %arg2: i32) -> (i32, i32, i32) {
    %c0_i32 = arith.constant 0 : i32
    %c0_i32_0 = arith.constant 0 : i32
    return %arg0, %c0_i32, %arg2 : i32, i32, i32
  }
  func.func @transform_1(%arg0: i32, %arg1: i32, %arg2: i32) -> (i32, i32) {
    %c0_i32 = arith.constant 0 : i32
    %c0_i32_0 = arith.constant 0 : i32
    return %arg1, %c0_i32 : i32, i32
  }
  func.func @transform_2(%arg0: i32, %arg1: i32, %arg2: i32) -> (i32, i32) {
    %c0_i32 = arith.constant 0 : i32
    %c0_i32_0 = arith.constant 0 : i32
    return %arg1, %c0_i32 : i32, i32
  }
  func.func @transform_3(%arg0: i32, %arg1: i32, %arg2: i32) -> (i32, i32, i32) {
    %c0_i32 = arith.constant 0 : i32
    return %arg0, %arg1, %arg2 : i32, i32, i32
  }
}

</mosaic_0001>

<bundles_post_ra>
// kernel: token_embedding_forward.1
= control target key start
LH: loop header
LB: loop body
LE: loop exit
PB: predicated region body
PF: predicated region fallthrough
CT: control target
= control target key end

     0   :  { %s637_s12 = smov 0   ;;  %s639_s13 = smov 0   ;;  %s702_s0 = inlined_call_operand.vmem [shape: f32[2,16,128], index: 0, kind: input, shape index: {}]   ;;  %s703_s1 = inlined_call_operand.vmem [shape: f32[32,16], index: 1, kind: input, shape index: {}]   ;;  %s704_s2 = inlined_call_operand.vmem [shape: f32[32,1], index: 2, kind: input, shape index: {}]   ;;  %s705_s3 = inlined_call_operand.vmem [shape: f32[2,32,128], index: 3, kind: output, shape index: {}]  }
   0x1   :  { %s641_s14 = smov 0  }
   0x2 LB: > { %s32_s15 = sadd.s32 1, %s610_s13  ;;  %p532_p0 = scmp.ge.s32.totalorder %s614_s14, 1  ;;  %s614_s14 = sphi %s641_s14, %s13_s14   ;;  %s610_s13 = sphi %s639_s13, %s707_s13   ;;  %s606_s12 = sphi %s637_s12, %s706_s12  }
   0x3   : > { %p34_p1 = scmp.ge.s32.totalorder %s32_s15, 2  ;;  %p187_p2 = scmp.lt.s32.totalorder %s614_s14, 3 }
   0x5   : > { %s709_s15 = smov (%p34_p1, %s32_s15), 0  ;;  %p188_p3 = pnand %p532_p0, %p187_p2 }
   0x6   : > { %p231_p4 = scmp.lt.s32.totalorder (!%p188_p3), %s606_s12, 1 }
   0x7   : > { %191 = sbr.rel (%p188_p3) target bundleno = 218 (0xda), region = 32 }
   0xc   : > { %v264_v0 = vld [vmem:[%s703_s1] sm:$0xff]  ;;  %vm294_vm0 = vcmask 130048   ;;  %v266_v1 = vld [vmem:[%s703_s1 + $0x10] sm:$0xff]  ;;  %s711_s12 = smov (!%p231_p4, %s606_s12), 1  ;;  %v616_v4 = vmov 0   ;;  %v265_v7 = vld [vmem:[%s703_s1 + $0x8] sm:$0xff] }
   0xd   : > { %555 = vmatprep.mubr.msk.f32.mxu0 %vm294_vm0, %v264_v0  ;;  %558 = vmatprep.mubr.msk.f32.mxu1 %vm294_vm0, %v266_v1  ;;  %v270_v2 = vld [vmem:[%s704_s2 + $0x10] sm:$0xff]  ;;  %v268_v3 = vld [vmem:[%s704_s2] sm:$0xff]  ;;  %s543_s24 = sshll.u32 %s711_s12, 4  ;;  %v267_v8 = vld [vmem:[%s703_s1 + $0x18] sm:$0xff]  ;;  %s544_s9 = sshll.u32 %s711_s12, 5 }
   0xe   : > { %591 = vset.pattern.permute.xlu1 %v616_v4  ;;  %590 = vset.pattern.permute.xlu0 %v616_v4  ;;  %s238_s27 = scalar_lea.vmem %s702_s0, %s543_s24  ;;  %v271_v9 = vld [vmem:[%s704_s2 + $0x18] sm:$0xff]  ;;  %v269_v10 = vld [vmem:[%s704_s2 + $0x8] sm:$0xff]  ;;  %s262_s16 = scalar_lea.vmem %s705_s3, %s544_s9 }
   0xf   : > { %286 = vperm.xlu1 %591, %v270_v2   ;;  %276 = vperm.xlu0 %590, %v268_v3   ;;  %v273_v5 = vld [vmem:[%s238_s27 + $0x8] sm:$0xff]  ;;  %v272_v6 = vld [vmem:[%s238_s27] sm:$0xff] }
  0x10   : > { %551 = vmatprep.subr.mxu0 %v273_v5  ;;  %561 = vmatprep.subr.mxu1 %v273_v5 }
  0x11   : > { %552 = vmatpush3.msra.mxu0 %v273_v5  ;;  %563 = vmatpush3.msra.mxu1 %v273_v5 }
  0x12   : > { %553 = vmatprep.subr.mxu0 %v272_v6  ;;  %562 = vmatprep.subr.mxu1 %v272_v6 }
  0x13   : > { %554 = vmatpush3.msra.mxu0 %v272_v6  ;;  %564 = vmatpush3.msra.mxu1 %v272_v6 }
  0x14   : > { %556 = vmatmul.mubr.msk.f32.vlgmr.msra.gmra.mxu0 %vm294_vm0, %v265_v7  ;;  %559 = vmatmul.mubr.msk.f32.vlgmr.msra.gmra.mxu1 %vm294_vm0, %v267_v8 }
  0x15   : > { %291 = vperm.xlu1 %591, %v271_v9   ;;  %281 = vperm.xlu0 %590, %v269_v10  }
  0x8a   : > { %v287_v11 = vpop.permute.xlu1 %286  ;;  %v277_v12 = vpop.permute.xlu0 %276 }
  0x90   : > { %v292_v13 = vpop.permute.xlu1 %291  ;;  %v282_v14 = vpop.permute.xlu0 %281 }
  0xd4   : > { %v557_v15 = vpop.f32.mrf.mxu0  ;;  %v560_v16 = vpop.f32.mrf.mxu1 }
  0xd5   : > { %v379_v17 = vadd.f32 %v557_v15, %v282_v14  ;;  %v389_v18 = vadd.f32 %v560_v16, %v292_v13 }
  0xd6   : > { %v373_v19 = vpop.f32.mrf.mxu0  ;;  %v383_v20 = vpop.f32.mrf.mxu1 }
  0xd7   : > { %393 = vst [vmem:[%s262_s16 + $0x8] sm:$0xff] %v379_v17  ;;  %395 = vst [vmem:[%s262_s16 + $0x18] sm:$0xff] %v389_v18  ;;  %v374_v21 = vadd.f32 %v373_v19, %v277_v12  ;;  %v384_v22 = vadd.f32 %v383_v20, %v287_v11 }
  0xd9   : > { %392 = vst [vmem:[%s262_s16] sm:$0xff] %v374_v21  ;;  %394 = vst [vmem:[%s262_s16 + $0x10] sm:$0xff] %v384_v22 }
  0xda PF: > { %s13_s14 = sadd.s32 1, %s614_s14   ;;  %s706_s12 = smov %s610_s13 }
  0xdb   : > { %p10_p5 = scmp.ge.s32.totalorder %s13_s14, 4   ;;  %s707_s13 = smov %s709_s15 }
  0xdd   :  { %12 = sbr.rel (!%p10_p5) target bundleno = 2 (0x2), region = 68 }

</bundles_post_ra>
